<compile_context>
chip_gen: v6e
topology: v6e:2x2x1
jax: 0.10.0
libtpu: 0.0.40
codegen_flags: <defaults>
</compile_context>

<pallas_src>
import functools
import math

import jax
import jax.numpy as jnp
from jax import lax
from jax.experimental import pallas as pl
from jax.experimental.pallas import tpu as pltpu

BN_EPS = 1e-5


def _mlp_evaluator_kernel(lat_ref, hp_ref, w1m_ref, small_ref, w2_ref, out_ref,
                          *, use_tanh_gelu: bool):
    # lat_ref:   (S_TILE, B, D)   matmul dtype (bf16 or f32)
    # hp_ref:    (S_TILE, B, 2)   f32
    # w1m_ref:   (D, H)           matmul dtype
    # small_ref: (8, H)           f32  [rows 0-1: w1_pose, 2: gamma, 3: beta, 4: b2 (cols :O)]
    # w2_ref:    (H, O)           f32
    # out_ref:   (S_TILE, B, O)   f32
    st, b, d = lat_ref.shape
    h_dim = w1m_ref.shape[1]
    o_dim = w2_ref.shape[1]
    rows = st * b

    lat2 = lat_ref[...].reshape(rows, d)
    hp2 = hp_ref[...].reshape(rows, 2)

    # ---- Linear 1: fused-step K=128 MXU dot (+ tiny K=2 MXU dot for the pose columns) ----
    h = jnp.dot(lat2, w1m_ref[...], preferred_element_type=jnp.float32)
    h = h + jnp.dot(hp2, small_ref[0:2, :], preferred_element_type=jnp.float32)
    # NOTE: Linear1 bias b1 intentionally omitted: it is exactly cancelled by the
    # training-mode BatchNorm mean subtraction below (zero effect on the output).

    h3 = h.reshape(st, b, h_dim)

    # ---- BatchNorm1d per step (training mode: biased stats over the B axis only) ----
    mean = jnp.mean(h3, axis=1, keepdims=True)           # (st, 1, H)
    diff = h3 - mean
    var = jnp.mean(diff * diff, axis=1, keepdims=True)   # (st, 1, H)
    gamma = small_ref[2:3, :]                            # (1, H)
    beta = small_ref[3:4, :]                             # (1, H)
    scale = gamma * lax.rsqrt(var + BN_EPS)              # (st, 1, H)
    shift = beta - mean * scale                          # (st, 1, H)
    hb = h3 * scale + shift

    # ---- GELU ----
    if use_tanh_gelu:
        # EUP tanh path (not bit-identical to nn.GELU() default).
        c = jnp.float32(0.7978845608028654)              # sqrt(2/pi)
        g = 0.5 * hb * (1.0 + jnp.tanh(c * (hb + 0.044715 * hb * hb * hb)))
    else:
        # Exact erf GELU — matches PyTorch nn.GELU default.
        g = 0.5 * hb * (1.0 + lax.erf(hb * jnp.float32(1.0 / math.sqrt(2.0))))

    # ---- Linear 2 (MXU) ----
    b2 = small_ref[4:5, 0:o_dim]                         # (1, O)
    logits = jnp.dot(g.reshape(rows, h_dim), w2_ref[...],
                     preferred_element_type=jnp.float32) + b2
    out_ref[...] = logits.reshape(st, b, o_dim).astype(out_ref.dtype)


def _pick_s_tile(s, b, target_rows=2048):
    """Largest divisor of s with s_tile*b <= target_rows, keeping grid length >= 2 when s >= 2."""
    max_tile = max(1, s // 2) if s >= 2 else 1
    best = 1
    for t in range(1, max_tile + 1):
        if s % t == 0 and t * b <= target_rows:
            best = t
    return best


def _pack_small_params(params, n_hidden, n_out):
    """Pack the tiny shared parameters into one (8, H) f32 array (fewer DMAs / VMEM buffers)."""
    small = jnp.zeros((8, n_hidden), jnp.float32)
    small = small.at[0:2, :].set(params["w1_pose"].astype(jnp.float32))
    small = small.at[2, :].set(params["gamma"].reshape(n_hidden).astype(jnp.float32))
    small = small.at[3, :].set(params["beta"].reshape(n_hidden).astype(jnp.float32))
    small = small.at[4, 0:n_out].set(params["b2"].reshape(n_out).astype(jnp.float32))
    return small


def mlp_evaluator_forward_steps(latent, headpose, params, *, use_tanh_gelu=False,
                                matmul_dtype=jnp.bfloat16, s_tile=None, target_rows=2048):
    """Run S independent forward evaluations in one gridded pallas_call.

    latent:   (S, B, n_input)  float32
    headpose: (S, B, 2)        float32
    Each step uses its own batch statistics for BatchNorm (== S separate module calls),
    even though S_TILE steps share one grid iteration.
    """
    S, B, D = latent.shape
    H = params["w1_main"].shape[1]
    O = params["w2"].shape[1]

    if s_tile is None:
        s_tile = _pick_s_tile(S, B, target_rows)
    assert S % s_tile == 0, "s_tile must divide S"
    grid_s = S // s_tile

    lat = latent.astype(matmul_dtype)
    hp = headpose.astype(jnp.float32)
    w1m = params["w1_main"].astype(matmul_dtype)
    small = _pack_small_params(params, H, O)
    w2 = params["w2"].astype(jnp.float32)

    kernel = functools.partial(_mlp_evaluator_kernel, use_tanh_gelu=use_tanh_gelu)

    grid_spec = pltpu.PrefetchScalarGridSpec(
        num_scalar_prefetch=0,
        grid=(grid_s,),
        in_specs=[
            pl.BlockSpec((s_tile, B, D), lambda s: (s, 0, 0)),   # latent (per-tile block)
            pl.BlockSpec((s_tile, B, 2), lambda s: (s, 0, 0)),   # headpose
            pl.BlockSpec((D, H), lambda s: (0, 0)),              # w1_main (shared)
            pl.BlockSpec((8, H), lambda s: (0, 0)),              # packed small params (shared)
            pl.BlockSpec((H, O), lambda s: (0, 0)),              # w2 (shared)
        ],
        out_specs=pl.BlockSpec((s_tile, B, O), lambda s: (s, 0, 0)),
    )

    return pl.pallas_call(
        kernel,
        out_shape=jax.ShapeDtypeStruct((S, B, O), jnp.float32),
        grid_spec=grid_spec,
        compiler_params=pltpu.CompilerParams(
            dimension_semantics=("parallel",),   # shard step-tiles across TCs (v7x)
        ),
    )(lat, hp, w1m, small, w2)


def mlp_evaluator_forward(latent, headpose, params, **kwargs):
    """Single forward call, identical to the PyTorch module's forward(latent, headpose)."""
    out = mlp_evaluator_forward_steps(latent[None], headpose[None], params, **kwargs)
    return out[0]


def init_params(key, n_input=128, n_out=2, n_hidden=64):
    """Deterministic synthetic parameters (PyTorch-Linear-style uniform init).

    Linear1 weight is stored pre-split: w1_main is rows [0:n_input], w1_pose rows
    [n_input:n_input+2] of the (n_input+2, n_hidden) weight used by the reference.
    """
    d_in = n_input + 2
    k1a, k1b, k2, k3, k4 = jax.random.split(key, 5)
    bound1 = 1.0 / math.sqrt(d_in)
    bound2 = 1.0 / math.sqrt(n_hidden)
    return {
        "w1_main": jax.random.uniform(k1a, (n_input, n_hidden), jnp.float32, -bound1, bound1),
        "w1_pose": jax.random.uniform(k1b, (2, n_hidden), jnp.float32, -bound1, bound1),
        "b1": jax.random.uniform(k2, (1, n_hidden), jnp.float32, -bound1, bound1),
        "gamma": jnp.ones((1, n_hidden), jnp.float32),   # BatchNorm1d weight
        "beta": jnp.zeros((1, n_hidden), jnp.float32),   # BatchNorm1d bias
        "w2": jax.random.uniform(k3, (n_hidden, n_out), jnp.float32, -bound2, bound2),
        "b2": jax.random.uniform(k4, (1, n_out), jnp.float32, -bound2, bound2),
    }


def _reference_forward(latent, headpose, params):
    """Pure-JAX f32 reference matching PyTorch exactly (including the BN-cancelled b1)."""
    w1 = jnp.concatenate([params["w1_main"], params["w1_pose"]], axis=0)
    x = jnp.concatenate([latent, headpose], axis=1)
    h = x @ w1 + params["b1"]
    mean = jnp.mean(h, axis=0, keepdims=True)
    var = jnp.mean((h - mean) ** 2, axis=0, keepdims=True)
    hn = (h - mean) / jnp.sqrt(var + BN_EPS) * params["gamma"] + params["beta"]
    g = 0.5 * hn * (1.0 + lax.erf(hn / jnp.sqrt(2.0)))
    return g @ params["w2"] + params["b2"]


if __name__ == "__main__":
    key = jax.random.PRNGKey(0)
    k_lat, k_pose, k_par = jax.random.split(key, 3)

    S, B, N_INPUT, N_OUT, N_HIDDEN = 4, 8, 128, 2, 64
    latent = jax.random.normal(k_lat, (S, B, N_INPUT), jnp.float32)
    headpose = jax.random.normal(k_pose, (S, B, 2), jnp.float32)
    params = init_params(k_par, N_INPUT, N_OUT, N_HIDDEN)

    # 1) Parity path: f32 matmuls -> strict check against the PyTorch-faithful reference.
    logits_f32 = mlp_evaluator_forward_steps(latent, headpose, params,
                                             matmul_dtype=jnp.float32)
    jax.block_until_ready(logits_f32)
    for s in range(S):
        ref = _reference_forward(latent[s], headpose[s], params)
        assert jnp.allclose(logits_f32[s], ref, atol=1e-4, rtol=1e-4), f"f32 step {s} mismatch"

    # 2) Default fast path: bf16 latent/w1_main into the MXU (f32 accumulate) -> loose check.
    logits_bf16 = mlp_evaluator_forward_steps(latent, headpose, params)
    jax.block_until_ready(logits_bf16)
    for s in range(S):
        ref = _reference_forward(latent[s], headpose[s], params)
        assert jnp.allclose(logits_bf16[s], ref, atol=3e-2, rtol=3e-2), f"bf16 step {s} mismatch"

    # 3) Single-call API (one module forward), same kernel with S=1 / grid=1.
    logits_single = mlp_evaluator_forward(latent[0], headpose[0], params,
                                          matmul_dtype=jnp.float32)
    jax.block_until_ready(logits_single)
    ref0 = _reference_forward(latent[0], headpose[0], params)
    assert jnp.allclose(logits_single, ref0, atol=1e-4, rtol=1e-4), "single-call mismatch"

    print("KERNEL_OK")
</pallas_src>

<mosaic_0001>
module attributes {stable_mosaic.version = 11 : i64} {
  func.func @_mlp_evaluator_kernel(%arg0: i32, %arg1: memref<2x8x128xf32, #tpu.memory_space<vmem>>, %arg2: memref<2x8x2xf32, #tpu.memory_space<vmem>>, %arg3: memref<128x64xf32, #tpu.memory_space<vmem>>, %arg4: memref<8x64xf32, #tpu.memory_space<vmem>>, %arg5: memref<64x2xf32, #tpu.memory_space<vmem>>, %arg6: memref<2x8x2xf32, #tpu.memory_space<vmem>>) attributes {dimension_semantics = [#tpu.dimension_semantics<parallel>], iteration_bounds = array<i64: 2>, scalar_prefetch = 0 : i64, scratch_operands = 0 : i64, tpu.core_type = #tpu.core_type<tc>, window_params = [{transform_indices = @transform_0, window_bounds = array<i64: 2, 8, 128>}, {transform_indices = @transform_1, window_bounds = array<i64: 2, 8, 2>}, {pipeline_mode = #tpu.pipeline_mode<synchronous>, transform_indices = @transform_2, window_bounds = array<i64: 128, 64>}, {pipeline_mode = #tpu.pipeline_mode<synchronous>, transform_indices = @transform_3, window_bounds = array<i64: 8, 64>}, {pipeline_mode = #tpu.pipeline_mode<synchronous>, transform_indices = @transform_4, window_bounds = array<i64: 64, 2>}, {transform_indices = @transform_5, window_bounds = array<i64: 2, 8, 2>}]} {
    %c0 = arith.constant 0 : index
    %c0_0 = arith.constant 0 : index
    %c0_1 = arith.constant 0 : index
    %0 = vector.load %arg1[%c0, %c0_0, %c0_1] : memref<2x8x128xf32, #tpu.memory_space<vmem>>, vector<2x8x128xf32>
    %1 = vector.shape_cast %0 : vector<2x8x128xf32> to vector<16x128xf32>
    %c0_2 = arith.constant 0 : index
    %c0_3 = arith.constant 0 : index
    %c0_4 = arith.constant 0 : index
    %2 = vector.load %arg2[%c0_2, %c0_3, %c0_4] : memref<2x8x2xf32, #tpu.memory_space<vmem>>, vector<2x8x2xf32>
    %3 = vector.shape_cast %2 : vector<2x8x2xf32> to vector<16x2xf32>
    %c0_5 = arith.constant 0 : index
    %c0_6 = arith.constant 0 : index
    %4 = vector.load %arg3[%c0_5, %c0_6] : memref<128x64xf32, #tpu.memory_space<vmem>>, vector<128x64xf32>
    %cst = arith.constant dense<0.000000e+00> : vector<16x64xf32>
    %5 = tpu.matmul %1, %4, %cst {dimension_numbers = #tpu.dot_dimension_numbers<[1], [0], [0], [1], [0, 0, 1, 1], [], []>} : vector<16x128xf32>, vector<128x64xf32>, vector<16x64xf32> -> vector<16x64xf32>
    %c0_7 = arith.constant 0 : index
    %c0_8 = arith.constant 0 : index
    %6 = vector.load %arg4[%c0_7, %c0_8] : memref<8x64xf32, #tpu.memory_space<vmem>>, vector<2x64xf32>
    %cst_9 = arith.constant dense<0.000000e+00> : vector<16x64xf32>
    %7 = tpu.matmul %3, %6, %cst_9 {dimension_numbers = #tpu.dot_dimension_numbers<[1], [0], [0], [1], [0, 0, 1, 1], [], []>} : vector<16x2xf32>, vector<2x64xf32>, vector<16x64xf32> -> vector<16x64xf32>
    %8 = arith.addf %5, %7 : vector<16x64xf32>
    %9 = vector.shape_cast %8 : vector<16x64xf32> to vector<2x8x64xf32>
    %cst_10 = arith.constant dense<0.000000e+00> : vector<2x64xf32>
    %10 = vector.multi_reduction <add>, %9, %cst_10 [1] : vector<2x8x64xf32> to vector<2x64xf32>
    %11 = vector.shape_cast %10 : vector<2x64xf32> to vector<2x1x64xf32>
    %cst_11 = arith.constant 8.000000e+00 : f32
    %12 = vector.broadcast %cst_11 : f32 to vector<2x1x64xf32>
    %13 = arith.divf %11, %12 : vector<2x1x64xf32>
    %14 = vector.broadcast %13 : vector<2x1x64xf32> to vector<2x8x64xf32>
    %15 = arith.subf %9, %14 : vector<2x8x64xf32>
    %16 = arith.mulf %15, %15 : vector<2x8x64xf32>
    %cst_12 = arith.constant dense<0.000000e+00> : vector<2x64xf32>
    %17 = vector.multi_reduction <add>, %16, %cst_12 [1] : vector<2x8x64xf32> to vector<2x64xf32>
    %18 = vector.shape_cast %17 : vector<2x64xf32> to vector<2x1x64xf32>
    %cst_13 = arith.constant 8.000000e+00 : f32
    %19 = vector.broadcast %cst_13 : f32 to vector<2x1x64xf32>
    %20 = arith.divf %18, %19 : vector<2x1x64xf32>
    %c2 = arith.constant 2 : index
    %c0_14 = arith.constant 0 : index
    %21 = vector.load %arg4[%c2, %c0_14] : memref<8x64xf32, #tpu.memory_space<vmem>>, vector<1x64xf32>
    %c3 = arith.constant 3 : index
    %c0_15 = arith.constant 0 : index
    %22 = vector.load %arg4[%c3, %c0_15] : memref<8x64xf32, #tpu.memory_space<vmem>>, vector<1x64xf32>
    %cst_16 = arith.constant 9.99999974E-6 : f32
    %23 = vector.broadcast %cst_16 : f32 to vector<2x1x64xf32>
    %24 = arith.addf %20, %23 : vector<2x1x64xf32>
    %25 = math.rsqrt %24 : vector<2x1x64xf32>
    %26 = vector.shape_cast %21 : vector<1x64xf32> to vector<1x1x64xf32>
    %27 = vector.broadcast %26 : vector<1x1x64xf32> to vector<2x1x64xf32>
    %28 = arith.mulf %27, %25 : vector<2x1x64xf32>
    %29 = arith.mulf %13, %28 : vector<2x1x64xf32>
    %30 = vector.shape_cast %22 : vector<1x64xf32> to vector<1x1x64xf32>
    %31 = vector.broadcast %30 : vector<1x1x64xf32> to vector<2x1x64xf32>
    %32 = arith.subf %31, %29 : vector<2x1x64xf32>
    %33 = vector.broadcast %28 : vector<2x1x64xf32> to vector<2x8x64xf32>
    %34 = arith.mulf %9, %33 : vector<2x8x64xf32>
    %35 = vector.broadcast %32 : vector<2x1x64xf32> to vector<2x8x64xf32>
    %36 = arith.addf %34, %35 : vector<2x8x64xf32>
    %cst_17 = arith.constant 5.000000e-01 : f32
    %37 = vector.broadcast %cst_17 : f32 to vector<2x8x64xf32>
    %38 = arith.mulf %37, %36 : vector<2x8x64xf32>
    %cst_18 = arith.constant 0.707106769 : f32
    %39 = vector.broadcast %cst_18 : f32 to vector<2x8x64xf32>
    %40 = arith.mulf %36, %39 : vector<2x8x64xf32>
    %41 = math.erf %40 : vector<2x8x64xf32>
    %cst_19 = arith.constant 1.000000e+00 : f32
    %42 = vector.broadcast %cst_19 : f32 to vector<2x8x64xf32>
    %43 = arith.addf %42, %41 : vector<2x8x64xf32>
    %44 = arith.mulf %38, %43 : vector<2x8x64xf32>
    %c4 = arith.constant 4 : index
    %c0_20 = arith.constant 0 : index
    %45 = vector.load %arg4[%c4, %c0_20] : memref<8x64xf32, #tpu.memory_space<vmem>>, vector<1x2xf32>
    %46 = vector.shape_cast %44 : vector<2x8x64xf32> to vector<16x64xf32>
    %c0_21 = arith.constant 0 : index
    %c0_22 = arith.constant 0 : index
    %47 = vector.load %arg5[%c0_21, %c0_22] : memref<64x2xf32, #tpu.memory_space<vmem>>, vector<64x2xf32>
    %cst_23 = arith.constant dense<0.000000e+00> : vector<16x2xf32>
    %48 = tpu.matmul %46, %47, %cst_23 {dimension_numbers = #tpu.dot_dimension_numbers<[1], [0], [0], [1], [0, 0, 1, 1], [], []>} : vector<16x64xf32>, vector<64x2xf32>, vector<16x2xf32> -> vector<16x2xf32>
    %49 = vector.broadcast %45 : vector<1x2xf32> to vector<16x2xf32>
    %50 = arith.addf %48, %49 : vector<16x2xf32>
    %51 = vector.shape_cast %50 : vector<16x2xf32> to vector<2x8x2xf32>
    %c0_24 = arith.constant 0 : index
    %c0_25 = arith.constant 0 : index
    %c0_26 = arith.constant 0 : index
    %52 = vector.load %arg6[%c0_24, %c0_25, %c0_26] : memref<2x8x2xf32, #tpu.memory_space<vmem>>, vector<2x8x2xf32>
    tpu.vector_store %arg6[%c0_24, %c0_25, %c0_26], %51 {strides = array<i32>} : memref<2x8x2xf32, #tpu.memory_space<vmem>>, vector<2x8x2xf32>,
    return
  }
  func.func @transform_0(%arg0: i32) -> (i32, i32, i32) {
    %c0_i32 = arith.constant 0 : i32
    %c0_i32_0 = arith.constant 0 : i32
    %c0_i32_1 = arith.constant 0 : i32
    return %arg0, %c0_i32, %c0_i32_0 : i32, i32, i32
  }
  func.func @transform_1(%arg0: i32) -> (i32, i32, i32) {
    %c0_i32 = arith.constant 0 : i32
    %c0_i32_0 = arith.constant 0 : i32
    %c0_i32_1 = arith.constant 0 : i32
    return %arg0, %c0_i32, %c0_i32_0 : i32, i32, i32
  }
  func.func @transform_2(%arg0: i32) -> (i32, i32) {
    %c0_i32 = arith.constant 0 : i32
    %c0_i32_0 = arith.constant 0 : i32
    %c0_i32_1 = arith.constant 0 : i32
    return %c0_i32, %c0_i32_0 : i32, i32
  }
  func.func @transform_3(%arg0: i32) -> (i32, i32) {
    %c0_i32 = arith.constant 0 : i32
    %c0_i32_0 = arith.constant 0 : i32
    %c0_i32_1 = arith.constant 0 : i32
    return %c0_i32, %c0_i32_0 : i32, i32
  }
  func.func @transform_4(%arg0: i32) -> (i32, i32) {
    %c0_i32 = arith.constant 0 : i32
    %c0_i32_0 = arith.constant 0 : i32
    %c0_i32_1 = arith.constant 0 : i32
    return %c0_i32, %c0_i32_0 : i32, i32
  }
  func.func @transform_5(%arg0: i32) -> (i32, i32, i32) {
    %c0_i32 = arith.constant 0 : i32
    %c0_i32_0 = arith.constant 0 : i32
    %c0_i32_1 = arith.constant 0 : i32
    return %arg0, %c0_i32, %c0_i32_0 : i32, i32, i32
  }
}

</mosaic_0001>

<bundles_post_ra>
// kernel: tpu_custom_call.1
= control target key start
LH: loop header
LB: loop body
LE: loop exit
PB: predicated region body
PF: predicated region fallthrough
CT: control target
= control target key end

     0   :  { %s839_s18 = smov 0   ;;  %s962_s0 = inlined_call_operand.vmem [shape: f32[4,8,128], index: 0, kind: input, shape index: {}]   ;;  %s963_s1 = inlined_call_operand.vmem [shape: f32[4,8,2], index: 1, kind: input, shape index: {}]   ;;  %s964_s2 = inlined_call_operand.vmem [shape: f32[128,64], index: 2, kind: input, shape index: {}]   ;;  %s965_s3 = inlined_call_operand.vmem [shape: f32[8,64], index: 3, kind: input, shape index: {}]   ;;  %s966_s4 = inlined_call_operand.vmem [shape: f32[64,2], index: 4, kind: input, shape index: {}]   ;;  %s967_s5 = inlined_call_operand.vmem [shape: f32[4,8,2], index: 5, kind: output, shape index: {}]  }
   0x1 LB: > { %s676_s19 = sadd.s32 4294967295, %s807_s18   ;;  %p680_p0 = scmp.ge.s32.totalorder %s807_s18, 1  ;;  %s807_s18 = sphi %s839_s18, %s15_s18  }
   0x2   : > { %p199_p1 = scmp.lt.s32.totalorder %s807_s18, 3 }
   0x4   : > { %p200_p2 = pnand %p680_p0, %p199_p1 }
   0x5   : > { %s681_s24 = sshll.u32 (!%p200_p2), %s676_s19, 1 }
   0x6   : > { %203 = sbr.rel (%p200_p2) target bundleno = 520 (0x208), region = 40  ;;  %p233_p3 = scmp.lt.s32.totalorder (!%p200_p2), %s681_s24, 3 }
   0xb   : > { %v269_v0 = vld [vmem:[%s964_s2 + $0x78] sm:$0xff]  ;;  %v268_v1 = vld [vmem:[%s964_s2 + $0x70] sm:$0xff]  ;;  %v267_v2 = vld [vmem:[%s964_s2 + $0x68] sm:$0xff]  ;;  %vm278_vm0 = vcmask 1041408   ;;  %s969_s24 = smov (!%p233_p3, %s681_s24), 3  ;;  %vm271_vm1 = vcmask 15360  }
   0xc   : > { %731 = vmatprep.subr.mxu1 %v269_v0  ;;  %v266_v3 = vld [vmem:[%s964_s2 + $0x60] sm:$0xff]  ;;  %s862_s6 = sshll.u32 %s969_s24, 3  ;;  %v265_v5 = vld [vmem:[%s964_s2 + $0x58] sm:$0xff]  ;;  %v264_v8 = vld [vmem:[%s964_s2 + $0x50] sm:$0xff]  ;;  %vm432_vm2 = vcmask 523264  }
   0xd   : > { %732 = vmatpush3.msra.mxu1 %v269_v0  ;;  %v270_v4 = vld [vmem:[%s965_s3] sm:$0x3]  ;;  %s242_s11 = scalar_lea.vmem %s963_s1, %s862_s6  ;;  %s875_s14 = scalar_lea.vmem %s962_s0, %s862_s6  ;;  %v263_v10 = vld [vmem:[%s964_s2 + $0x48] sm:$0xff]  ;;  %v261_v12 = vld [vmem:[%s964_s2 + $0x38] sm:$0xff] }
   0xe   : > { %733 = vmatprep.subr.mxu1 %v268_v1  ;;  %726 = vmatprep.subr.msk.mxu0 %vm278_vm0, %v270_v4  ;;  %v252_v6 = vld [vmem:[%s242_s11] sm:$0xff]  ;;  %v253_v7 = vld [vmem:[%s242_s11 + $0x8] sm:$0xff]  ;;  %v260_v13 = vld [vmem:[%s964_s2 + $0x30] sm:$0xff]  ;;  %s248_s16 = scalar_lea.vmem %s967_s5, %s862_s6 }
   0xf   : > { %734 = vmatpush3.msra.mxu1 %v268_v1  ;;  %727 = vmatpush3.msk.msra.mxu0 %vm278_vm0, %v270_v4  ;;  %v250_v9 = vld [vmem:[%s875_s14] sm:$0xff]  ;;  %v259_v14 = vld [vmem:[%s964_s2 + $0x28] sm:$0xff]  ;;  %v257_v16 = vld [vmem:[%s964_s2 + $0x18] sm:$0xff] }
  0x10   : > { %735 = vmatprep.subr.mxu1 %v267_v2  ;;  %728 = vmatprep.mubr.msk.f32.mxu0 %vm271_vm1, %v252_v6  ;;  %v262_v11 = vld [vmem:[%s964_s2 + $0x40] sm:$0xff]  ;;  %v256_v17 = vld [vmem:[%s964_s2 + $0x10] sm:$0xff]  ;;  %v255_v18 = vld [vmem:[%s964_s2 + $0x8] sm:$0xff] }
  0x11   : > { %736 = vmatpush3.msra.mxu1 %v267_v2  ;;  %729 = vmatmul.mubr.msk.f32.vlgmr.msra.gmra.mxu0 %vm271_vm1, %v253_v7  ;;  %v258_v15 = vld [vmem:[%s964_s2 + $0x20] sm:$0xff]  ;;  %v251_v20 = vld [vmem:[%s875_s14 + $0x8] sm:$0xff]  ;;  %v520_v21 = vld [vmem:[%s966_s4 + $0x38] sm:$0xff] }
  0x12   : > { %737 = vmatprep.subr.mxu1 %v266_v3  ;;  %763 = vmatprep.mubr.f32.mxu1 %v250_v9  ;;  %v254_v19 = vld [vmem:[%s964_s2] sm:$0xff]  ;;  %v519_v22 = vld [vmem:[%s966_s4 + $0x30] sm:$0xff]  ;;  %v518_v23 = vld [vmem:[%s966_s4 + $0x28] sm:$0xff]  ;;  %v482_v9 = vlaneseq }
  0x13   : > { %738 = vmatpush3.msra.mxu1 %v266_v3  ;;  %766 = vmatprep.subr.mxu0 %v520_v21  ;;  %v517_v24 = vld [vmem:[%s966_s4 + $0x20] sm:$0xff]  ;;  %v516_v25 = vld [vmem:[%s966_s4 + $0x18] sm:$0xff]  ;;  %v515_v26 = vld [vmem:[%s966_s4 + $0x10] sm:$0xff] }
  0x14   : > { %739 = vmatprep.subr.mxu1 %v265_v5  ;;  %767 = vmatpush3.msra.mxu0 %v520_v21  ;;  %v514_v27 = vld [vmem:[%s966_s4 + $0x8] sm:$0xff]  ;;  %v513_v28 = vld [vmem:[%s966_s4] sm:$0xff] }
  0x15   : > { %740 = vmatpush3.msra.mxu1 %v265_v5  ;;  %768 = vmatprep.subr.mxu0 %v519_v22 }
  0x16   : > { %741 = vmatprep.subr.mxu1 %v264_v8  ;;  %769 = vmatpush3.msra.mxu0 %v519_v22 }
  0x17   : > { %742 = vmatpush3.msra.mxu1 %v264_v8  ;;  %770 = vmatprep.subr.mxu0 %v518_v23 }
  0x18   : > { %743 = vmatprep.subr.mxu1 %v263_v10  ;;  %771 = vmatpush3.msra.mxu0 %v518_v23 }
  0x19   : > { %744 = vmatpush3.msra.mxu1 %v263_v10  ;;  %772 = vmatprep.subr.mxu0 %v517_v24  ;;  %v483_v10 = vshrl.u32 %v482_v9, 7 }
  0x1a   : > { %745 = vmatprep.subr.mxu1 %v262_v11  ;;  %773 = vmatpush3.msra.mxu0 %v517_v24 }
  0x1b   : > { %746 = vmatpush3.msra.mxu1 %v262_v11  ;;  %774 = vmatprep.subr.mxu0 %v516_v25  ;;  %v470_v11 = vld [vmem:[%s965_s3 + $0x2] sm:$0x1] }
  0x1c   : > { %747 = vmatprep.subr.mxu1 %v261_v12  ;;  %775 = vmatpush3.msra.mxu0 %v516_v25 }
  0x1d   : > { %748 = vmatpush3.msra.mxu1 %v261_v12  ;;  %776 = vmatprep.subr.mxu0 %v515_v26  ;;  %v484_v12 = vsub.s32 0, %v483_v10 }
  0x1e   : > { %749 = vmatprep.subr.mxu1 %v260_v13  ;;  %777 = vmatpush3.msra.mxu0 %v515_v26 }
  0x1f   : > { %750 = vmatpush3.msra.mxu1 %v260_v13  ;;  %778 = vmatprep.subr.mxu0 %v514_v27 }
  0x20   : > { %751 = vmatprep.subr.mxu1 %v259_v14  ;;  %779 = vmatpush3.msra.mxu0 %v514_v27 }
  0x21   : > { %752 = vmatpush3.msra.mxu1 %v259_v14  ;;  %780 = vmatprep.subr.mxu0 %v513_v28 }
  0x22   : > { %753 = vmatprep.subr.mxu1 %v258_v15  ;;  %781 = vmatpush3.msra.mxu0 %v513_v28 }
  0x23   : > { %754 = vmatpush3.msra.mxu1 %v258_v15 }
  0x24   : > { %755 = vmatprep.subr.mxu1 %v257_v16 }
  0x25   : > { %756 = vmatpush3.msra.mxu1 %v257_v16  ;;  %v471_v16 = vld [vmem:[%s965_s3 + $0x3] sm:$0x1] }
  0x26   : > { %757 = vmatprep.subr.mxu1 %v256_v17 }
  0x27   : > { %758 = vmatpush3.msra.mxu1 %v256_v17 }
  0x28   : > { %759 = vmatprep.subr.mxu1 %v255_v18 }
  0x29   : > { %760 = vmatpush3.msra.mxu1 %v255_v18 }
  0x2a   : > { %761 = vmatprep.subr.mxu1 %v254_v19 }
  0x2b   : > { %762 = vmatpush3.msra.mxu1 %v254_v19 }
  0x2c   : > { %764 = vmatmul.mubr.f32.vlgmr.msra.gmra.mxu1 %v251_v20 }
  0xd1   : > { %v730_v29 = vpop.f32.mrf.mxu0 }
  0xd3   : > { %v348_v32 = vpop.f32.mrf.mxu0 }
  0xec   : > { %v765_v30 = vpop.f32.mrf.mxu1 }
  0xed   : > { %v429_v31 = vadd.f32 %v765_v30, %v730_v29 }
  0xee   : > { %v423_v33 = vpop.f32.mrf.mxu1 }
  0xef   : > { %v440_v34 = vsel %vm432_vm2, %v429_v31, 0.0  ;;  %v424_v35 = vadd.f32 %v423_v33, %v348_v32 }
  0xf0   : > { %v441_v36 = vrot.slane %v440_v34, 4 }
  0xf1   : > { %v433_v37 = vsel %vm432_vm2, %v424_v35, 0.0 }
  0xf2   : > { %v442_v38 = vadd.f32 %v441_v36, %v440_v34  ;;  %v434_v39 = vrot.slane %v433_v37, 4 }
  0xf4   : > { %v443_v40 = vrot.slane %v442_v38, 2  ;;  %v435_v41 = vadd.f32 %v434_v39, %v433_v37 }
  0xf6   : > { %v444_v42 = vadd.f32 %v443_v40, %v442_v38  ;;  %v436_v43 = vrot.slane %v435_v41, 2 }
  0xf8   : > { %v445_v44 = vrot.slane %v444_v42, 1  ;;  %v437_v45 = vadd.f32 %v436_v43, %v435_v41 }
  0xfa   : > { %v446_v46 = vadd.f32 %v445_v44, %v444_v42  ;;  %v438_v47 = vrot.slane %v437_v45, 1 }
  0xfc   : > { %v449_v48 = vmul.f32 0.125, %v446_v46  ;;  %v439_v49 = vadd.f32 %v438_v47, %v437_v45 }
  0xfe   : > { %v451_v50 = vsub.f32 %v429_v31, %v449_v48  ;;  %v448_v51 = vmul.f32 0.125, %v439_v49 }
 0x100   : > { %v453_v52 = vmul.f32 %v451_v50, %v451_v50  ;;  %v450_v53 = vsub.f32 %v424_v35, %v448_v51 }
 0x102   : > { %v461_v54 = vsel %vm432_vm2, %v453_v52, 0.0  ;;  %v452_v55 = vmul.f32 %v450_v53, %v450_v53 }
 0x103   : > { %v462_v56 = vrot.slane %v461_v54, 4 }
 0x104   : > { %v454_v57 = vsel %vm432_vm2, %v452_v55, 0.0 }
 0x105   : > { %v463_v58 = vadd.f32 %v462_v56, %v461_v54  ;;  %v455_v59 = vrot.slane %v454_v57, 4 }
 0x107   : > { %v464_v60 = vrot.slane %v463_v58, 2  ;;  %v456_v61 = vadd.f32 %v455_v59, %v454_v57 }
 0x109   : > { %v465_v62 = vadd.f32 %v464_v60, %v463_v58  ;;  %v457_v63 = vrot.slane %v456_v61, 2 }
 0x10b   : > { %v466_v0 = vrot.slane %v465_v62, 1  ;;  %v458_v1 = vadd.f32 %v457_v63, %v456_v61 }
 0x10d   : > { %v467_v2 = vadd.f32 %v466_v0, %v465_v62  ;;  %v459_v3 = vrot.slane %v458_v1, 1 }
 0x10f   : > { %v469_v4 = vmul.f32 0.125, %v467_v2  ;;  %v460_v5 = vadd.f32 %v459_v3, %v458_v1 }
 0x111   : > { %v473_v6 = vadd.f32 1e-05, %v469_v4  ;;  %v468_v7 = vmul.f32 0.125, %v460_v5 }
 0x113   : > { %793 = vrsqrt.f32 %v473_v6  ;;  %v472_v8 = vadd.f32 1e-05, %v468_v7 }
 0x115   : > { %795 = vrsqrt.f32 %v472_v8 }
 0x120   : > { %v794_v13 = vpop.eup %793 }
 0x121   : > { %v477_v14 = vmul.f32 %v794_v13, %v470_v11 }
 0x122   : > { %v796_v15 = vpop.eup %795 }
 0x123   : > { %v479_v17 = vmul.f32 %v477_v14, %v449_v48  ;;  %v489_v18 = vrot.slane %v477_v14, %v484_v12  ;;  %v476_v19 = vmul.f32 %v796_v15, %v470_v11 }
 0x125   : > { %v481_v20 = vsub.f32 %v471_v16, %v479_v17  ;;  %v478_v21 = vmul.f32 %v476_v19, %v448_v51  ;;  %v485_v22 = vrot.slane %v476_v19, %v484_v12  ;;  %v491_v23 = vmul.f32 %v489_v18, %v429_v31 }
 0x127   : > { %v499_v24 = vrot.slane %v481_v20, %v484_v12  ;;  %v480_v25 = vsub.f32 %v471_v16, %v478_v21  ;;  %v490_v27 = vmul.f32 %v485_v22, %v424_v35  ;;  %v690_v35 = vld [vmem:[%s965_s3 + $0x4] ss:$0 sm:$0xff] }
 0x129   : > { %v501_v26 = vadd.f32 %v499_v24, %v491_v23  ;;  %v495_v28 = vrot.slane %v480_v25, %v484_v12 }
 0x12b   : > { %v505_v29 = vmul.f32 0.70710677, %v501_v26  ;;  %v500_v30 = vadd.f32 %v495_v28, %v490_v27  ;;  %v503_v39 = vmul.f32 0.5, %v501_v26 }
 0x12d   : > { %797 = verf.f32 %v505_v29  ;;  %v504_v32 = vmul.f32 0.70710677, %v500_v30  ;;  %v502_v37 = vmul.f32 0.5, %v500_v30 }
 0x12f   : > { %799 = verf.f32 %v504_v32 }
 0x13a   : > { %v798_v33 = vpop.eup %797 }
 0x13b   : > { %v509_v36 = vadd.f32 1.0, %v798_v33 }
 0x13c   : > { %v800_v34 = vpop.eup %799 }
 0x13d   : > { %v508_v38 = vadd.f32 1.0, %v800_v34  ;;  %v511_v41 = vmul.f32 %v509_v36, %v503_v39 }
 0x13f   : > { %v510_v40 = vmul.f32 %v508_v38, %v502_v37 }
 0x141   : > { %782 = vmatprep.mubr.msk.f32.mxu0 %vm432_vm2, %v510_v40 }
 0x142   : > { %783 = vmatmul.mubr.msk.f32.vlgmr.msra.gmra.mxu0 %vm432_vm2, %v511_v41 }
 0x202   : > { %v784_v31 = vpop.f32.mrf.mxu0 }
 0x203   : > { %v603_v44 = vadd.f32 %v784_v31, %v690_v35 }
 0x204   : > { %v597_v42 = vpop.f32.mrf.mxu0 }
 0x205   : > { %v598_v43 = vadd.f32 %v690_v35, %v597_v42  ;;  %607 = vst.msk [vmem:[%s248_s16 + $0x8] sm:$0xff] %vm271_vm1, %v603_v44 }
 0x207   : > { %606 = vst.msk [vmem:[%s248_s16] sm:$0xff] %vm271_vm1, %v598_v43 }
 0x208 PF: > { %s15_s18 = sadd.s32 1, %s807_s18  }
 0x209   : > { %p12_p4 = scmp.ge.s32.totalorder %s15_s18, 4  }
 0x20b   :  { %14 = sbr.rel (!%p12_p4) target bundleno = 1 (0x1), region = 73 }

</bundles_post_ra>
